<compile_context>
chip_gen: v5e
topology: v5e:2x2
jax: 0.10.0
libtpu: 0.0.40
codegen_flags: <defaults>
</compile_context>

<pallas_src>
import jax
import jax.numpy as jnp
from jax.experimental import pallas as pl
from jax.experimental.pallas import tpu as pltpu

EPS = 1e-5


def resblock_kernel(x_ref, wc1_ref, g1_ref, be1_ref,
                    wc2_ref, g2_ref, be2_ref,
                    wr_ref, gr_ref, ber_ref,
                    out_ref, xpad_ref, hpad_ref):
    N, L, Cin = x_ref.shape
    Cout = wr_ref.shape[-1]

    def conv3(pad_ref, wcat_ref):
        # 3-tap "same" conv as ONE MXU matmul: wcat has the per-tap weights
        # side by side along the output axis, so P[:, k*Cout:(k+1)*Cout] holds
        # tap-k partial products at every (padded) position.  The conv output
        # is then just two shifted adds of lane slices of P.
        c = pad_ref.shape[-1]
        lp = pad_ref.shape[1]
        p = jnp.dot(pad_ref[...].reshape(N * lp, c), wcat_ref[...],
                    preferred_element_type=jnp.float32)
        p = p.reshape(N, lp, 3 * Cout)
        return (p[:, 0:L, 0:Cout]
                + p[:, 1:L + 1, Cout:2 * Cout]
                + p[:, 2:L + 2, 2 * Cout:3 * Cout])           # (N, L, Cout)

    def bn(h, g_ref, b_ref):
        # Training-mode BatchNorm1d: single-pass stats (biased var = E[h^2]-m^2)
        # folded into one per-channel scale + shift (one FMA per element).
        m = jnp.mean(h, axis=(0, 1), keepdims=True)
        ex2 = jnp.mean(h * h, axis=(0, 1), keepdims=True)
        scale = g_ref[...] * jax.lax.rsqrt(ex2 - m * m + EPS)
        shift = b_ref[...] - m * scale
        return h * scale + shift

    # Stage x into a zero-padded VMEM scratch (padded length rounded up to a
    # sublane multiple).  Only boundary/tail rows are zeroed -- no full clear.
    Lpx = xpad_ref.shape[1]
    xpad_ref[:, 0:1, :] = jnp.zeros((N, 1, Cin), jnp.float32)
    xpad_ref[:, L + 1:Lpx, :] = jnp.zeros((N, Lpx - L - 1, Cin), jnp.float32)
    xpad_ref[:, 1:L + 1, :] = x_ref[...]

    # Branch: conv1 -> bn1 -> relu.  (Conv bias omitted: cancelled by BN.)
    h1 = jax.nn.relu(bn(conv3(xpad_ref, wc1_ref), g1_ref, be1_ref))

    # Re-pad h1 (boundary rows only) and run conv2 -> bn2.
    Lph = hpad_ref.shape[1]
    hpad_ref[:, 0:1, :] = jnp.zeros((N, 1, Cout), jnp.float32)
    hpad_ref[:, L + 1:Lph, :] = jnp.zeros((N, Lph - L - 1, Cout), jnp.float32)
    hpad_ref[:, 1:L + 1, :] = h1
    h2 = bn(conv3(hpad_ref, wc2_ref), g2_ref, be2_ref)

    # Residual path: 1x1 conv -> bn (num_ins != num_outs case); bias cancelled by BN.
    res = jnp.dot(x_ref[...].reshape(N * L, Cin), wr_ref[...],
                  preferred_element_type=jnp.float32).reshape(N, L, Cout)
    res = bn(res, gr_ref, ber_ref)

    out_ref[...] = jax.nn.relu(h2 + res)


def _fuse_taps(w):
    # (3, Cin, Cout) -> (Cin, 3*Cout): taps side by side along the output axis,
    # so one matmul computes all three taps' partial products.
    k, cin, cout = w.shape
    return jnp.transpose(w, (1, 0, 2)).reshape(cin, k * cout)


def resblock_forward(x_ncl, params):
    """x_ncl: (N, C_in, L) like PyTorch; returns (N, C_out, L)."""
    x = jnp.transpose(x_ncl, (0, 2, 1)).astype(jnp.float32)     # (N, L, Cin)
    N, L, Cin = x.shape
    Cout = params["w1"].shape[-1]
    # Padded length used by the in-kernel staging buffers, rounded up to a
    # sublane (8) multiple so every reshape splits on a tile boundary.
    Lp = L + 2 + ((-(L + 2)) % 8)

    args = (x,
            _fuse_taps(params["w1"]), params["g1"], params["be1"],
            _fuse_taps(params["w2"]), params["g2"], params["be2"],
            params["wr"], params["gr"], params["ber"])

    out = pl.pallas_call(
        resblock_kernel,
        out_shape=jax.ShapeDtypeStruct((N, L, Cout), jnp.float32),
        in_specs=[pl.BlockSpec(memory_space=pltpu.MemorySpace.VMEM)
                  for _ in args],
        out_specs=pl.BlockSpec(memory_space=pltpu.MemorySpace.VMEM),
        scratch_shapes=[pltpu.VMEM((N, Lp, Cin), jnp.float32),
                        pltpu.VMEM((N, Lp, Cout), jnp.float32)],
        compiler_params=pltpu.CompilerParams(
            vmem_limit_bytes=32 * 1024 * 1024),  # fits v7x's 64 MiB physical VMEM
    )(*args)
    return jnp.transpose(out, (0, 2, 1))                        # (N, Cout, L)


def resblock_ref(x_ncl, params):
    """Pure-JAX reference of the PyTorch training-mode forward (biases kept)."""
    x = jnp.transpose(x_ncl, (0, 2, 1)).astype(jnp.float32)
    xp = jnp.pad(x, ((0, 0), (1, 1), (0, 0)))
    L = x.shape[1]

    def conv3(xpad, w, b):
        return sum(jnp.einsum("nlc,co->nlo", xpad[:, k:k + L, :], w[k])
                   for k in range(3)) + b[0]

    def bn(h, g, b):
        m = h.mean(axis=(0, 1), keepdims=True)
        v = ((h - m) ** 2).mean(axis=(0, 1), keepdims=True)
        return (h - m) / jnp.sqrt(v + EPS) * g[0] + b[0]

    h1 = jax.nn.relu(bn(conv3(xp, params["w1"], params["b1"]),
                        params["g1"], params["be1"]))
    h1p = jnp.pad(h1, ((0, 0), (1, 1), (0, 0)))
    h2 = bn(conv3(h1p, params["w2"], params["b2"]), params["g2"], params["be2"])
    res = bn(jnp.einsum("nlc,co->nlo", x, params["wr"]) + params["br"][0],
             params["gr"], params["ber"])
    return jnp.transpose(jax.nn.relu(h2 + res), (0, 2, 1))


def make_params(key, num_ins, num_outs):
    ks = jax.random.split(key, 10)
    s1 = 1.0 / (num_ins * 3) ** 0.5
    s2 = 1.0 / (num_outs * 3) ** 0.5
    sr = 1.0 / num_ins ** 0.5
    return {
        # conv weights stored as (K, Cin, Cout); biases / BN params as (1, C)
        "w1": jax.random.normal(ks[0], (3, num_ins, num_outs), jnp.float32) * s1,
        "b1": jax.random.normal(ks[1], (1, num_outs), jnp.float32) * s1,
        "g1": 1.0 + 0.1 * jax.random.normal(ks[2], (1, num_outs), jnp.float32),
        "be1": 0.1 * jax.random.normal(ks[3], (1, num_outs), jnp.float32),
        "w2": jax.random.normal(ks[4], (3, num_outs, num_outs), jnp.float32) * s2,
        "b2": jax.random.normal(ks[5], (1, num_outs), jnp.float32) * s2,
        "g2": 1.0 + 0.1 * jax.random.normal(ks[6], (1, num_outs), jnp.float32),
        "be2": 0.1 * jax.random.normal(ks[7], (1, num_outs), jnp.float32),
        "wr": jax.random.normal(ks[8], (num_ins, num_outs), jnp.float32) * sr,
        "br": jnp.zeros((1, num_outs), jnp.float32),
        "gr": jnp.ones((1, num_outs), jnp.float32),
        "ber": 0.1 * jax.random.normal(ks[9], (1, num_outs), jnp.float32),
    }


if __name__ == "__main__":
    key = jax.random.PRNGKey(0)
    k_x, k_p = jax.random.split(key)

    N, num_ins, num_outs, L = 2, 8, 16, 16        # small demo shapes, stride=1
    x = jax.random.normal(k_x, (N, num_ins, L), jnp.float32)   # PyTorch NCL layout
    params = make_params(k_p, num_ins, num_outs)

    out = resblock_forward(x, params)
    out = jax.block_until_ready(out)

    ref = resblock_ref(x, params)
    assert out.shape == (N, num_outs, L)
    assert jnp.allclose(out, ref, atol=1e-4, rtol=1e-4), "mismatch vs JAX reference"

    print("KERNEL_OK")
</pallas_src>

<mosaic_0001>
module attributes {stable_mosaic.version = 11 : i64} {
  func.func @resblock_kernel(%arg0: memref<2x16x8xf32, #tpu.memory_space<vmem>>, %arg1: memref<8x48xf32, #tpu.memory_space<vmem>>, %arg2: memref<1x16xf32, #tpu.memory_space<vmem>>, %arg3: memref<1x16xf32, #tpu.memory_space<vmem>>, %arg4: memref<16x48xf32, #tpu.memory_space<vmem>>, %arg5: memref<1x16xf32, #tpu.memory_space<vmem>>, %arg6: memref<1x16xf32, #tpu.memory_space<vmem>>, %arg7: memref<8x16xf32, #tpu.memory_space<vmem>>, %arg8: memref<1x16xf32, #tpu.memory_space<vmem>>, %arg9: memref<1x16xf32, #tpu.memory_space<vmem>>, %arg10: memref<2x16x16xf32, #tpu.memory_space<vmem>>, %arg11: memref<2x24x8xf32, #tpu.memory_space<vmem>>, %arg12: memref<2x24x16xf32, #tpu.memory_space<vmem>>) attributes {dimension_semantics = [], scalar_prefetch = 0 : i64, scratch_operands = 2 : i64, tpu.core_type = #tpu.core_type<tc>} {
    %cst = arith.constant 0.000000e+00 : f32
    %0 = vector.broadcast %cst : f32 to vector<2x1x8xf32>
    %c0 = arith.constant 0 : index
    %c0_0 = arith.constant 0 : index
    %c0_1 = arith.constant 0 : index
    %1 = vector.load %arg11[%c0, %c0_0, %c0_1] : memref<2x24x8xf32, #tpu.memory_space<vmem>>, vector<2x1x8xf32>
    tpu.vector_store %arg11[%c0, %c0_0, %c0_1], %0 {strides = array<i32>} : memref<2x24x8xf32, #tpu.memory_space<vmem>>, vector<2x1x8xf32>,
    %cst_2 = arith.constant 0.000000e+00 : f32
    %2 = vector.broadcast %cst_2 : f32 to vector<2x7x8xf32>
    %c0_3 = arith.constant 0 : index
    %c17 = arith.constant 17 : index
    %c0_4 = arith.constant 0 : index
    %3 = vector.load %arg11[%c0_3, %c17, %c0_4] : memref<2x24x8xf32, #tpu.memory_space<vmem>>, vector<2x7x8xf32>
    tpu.vector_store %arg11[%c0_3, %c17, %c0_4], %2 {strides = array<i32>} : memref<2x24x8xf32, #tpu.memory_space<vmem>>, vector<2x7x8xf32>,
    %c0_5 = arith.constant 0 : index
    %c0_6 = arith.constant 0 : index
    %c0_7 = arith.constant 0 : index
    %4 = vector.load %arg0[%c0_5, %c0_6, %c0_7] : memref<2x16x8xf32, #tpu.memory_space<vmem>>, vector<2x16x8xf32>
    %c0_8 = arith.constant 0 : index
    %c1 = arith.constant 1 : index
    %c0_9 = arith.constant 0 : index
    %5 = vector.load %arg11[%c0_8, %c1, %c0_9] : memref<2x24x8xf32, #tpu.memory_space<vmem>>, vector<2x16x8xf32>
    tpu.vector_store %arg11[%c0_8, %c1, %c0_9], %4 {strides = array<i32>} : memref<2x24x8xf32, #tpu.memory_space<vmem>>, vector<2x16x8xf32>,
    %c0_10 = arith.constant 0 : index
    %c0_11 = arith.constant 0 : index
    %c0_12 = arith.constant 0 : index
    %6 = vector.load %arg11[%c0_10, %c0_11, %c0_12] : memref<2x24x8xf32, #tpu.memory_space<vmem>>, vector<2x24x8xf32>
    %7 = vector.shape_cast %6 : vector<2x24x8xf32> to vector<48x8xf32>
    %c0_13 = arith.constant 0 : index
    %c0_14 = arith.constant 0 : index
    %8 = vector.load %arg1[%c0_13, %c0_14] : memref<8x48xf32, #tpu.memory_space<vmem>>, vector<8x48xf32>
    %cst_15 = arith.constant dense<0.000000e+00> : vector<48x48xf32>
    %9 = tpu.matmul %7, %8, %cst_15 {dimension_numbers = #tpu.dot_dimension_numbers<[1], [0], [0], [1], [0, 0, 1, 1], [], []>} : vector<48x8xf32>, vector<8x48xf32>, vector<48x48xf32> -> vector<48x48xf32>
    %10 = vector.shape_cast %9 : vector<48x48xf32> to vector<2x24x48xf32>
    %11 = vector.extract_strided_slice %10 {offsets = [0, 0, 0], sizes = [2, 16, 16], strides = [1, 1, 1]} : vector<2x24x48xf32> to vector<2x16x16xf32>
    %12 = vector.extract_strided_slice %10 {offsets = [0, 1, 16], sizes = [2, 16, 16], strides = [1, 1, 1]} : vector<2x24x48xf32> to vector<2x16x16xf32>
    %13 = arith.addf %11, %12 : vector<2x16x16xf32>
    %14 = vector.extract_strided_slice %10 {offsets = [0, 2, 32], sizes = [2, 16, 16], strides = [1, 1, 1]} : vector<2x24x48xf32> to vector<2x16x16xf32>
    %15 = arith.addf %13, %14 : vector<2x16x16xf32>
    %cst_16 = arith.constant dense<0.000000e+00> : vector<16xf32>
    %16 = vector.multi_reduction <add>, %15, %cst_16 [0, 1] : vector<2x16x16xf32> to vector<16xf32>
    %17 = vector.shape_cast %16 : vector<16xf32> to vector<1x1x16xf32>
    %cst_17 = arith.constant 3.200000e+01 : f32
    %18 = vector.broadcast %cst_17 : f32 to vector<1x1x16xf32>
    %19 = arith.divf %17, %18 : vector<1x1x16xf32>
    %20 = arith.mulf %15, %15 : vector<2x16x16xf32>
    %cst_18 = arith.constant dense<0.000000e+00> : vector<16xf32>
    %21 = vector.multi_reduction <add>, %20, %cst_18 [0, 1] : vector<2x16x16xf32> to vector<16xf32>
    %22 = vector.shape_cast %21 : vector<16xf32> to vector<1x1x16xf32>
    %cst_19 = arith.constant 3.200000e+01 : f32
    %23 = vector.broadcast %cst_19 : f32 to vector<1x1x16xf32>
    %24 = arith.divf %22, %23 : vector<1x1x16xf32>
    %c0_20 = arith.constant 0 : index
    %c0_21 = arith.constant 0 : index
    %25 = vector.load %arg2[%c0_20, %c0_21] : memref<1x16xf32, #tpu.memory_space<vmem>>, vector<1x16xf32>
    %26 = arith.mulf %19, %19 : vector<1x1x16xf32>
    %27 = arith.subf %24, %26 : vector<1x1x16xf32>
    %cst_22 = arith.constant 9.99999974E-6 : f32
    %28 = vector.broadcast %cst_22 : f32 to vector<1x1x16xf32>
    %29 = arith.addf %27, %28 : vector<1x1x16xf32>
    %30 = math.rsqrt %29 : vector<1x1x16xf32>
    %31 = vector.shape_cast %25 : vector<1x16xf32> to vector<1x1x16xf32>
    %32 = arith.mulf %31, %30 : vector<1x1x16xf32>
    %c0_23 = arith.constant 0 : index
    %c0_24 = arith.constant 0 : index
    %33 = vector.load %arg3[%c0_23, %c0_24] : memref<1x16xf32, #tpu.memory_space<vmem>>, vector<1x16xf32>
    %34 = arith.mulf %19, %32 : vector<1x1x16xf32>
    %35 = vector.shape_cast %33 : vector<1x16xf32> to vector<1x1x16xf32>
    %36 = arith.subf %35, %34 : vector<1x1x16xf32>
    %37 = vector.broadcast %32 : vector<1x1x16xf32> to vector<2x16x16xf32>
    %38 = arith.mulf %15, %37 : vector<2x16x16xf32>
    %39 = vector.broadcast %36 : vector<1x1x16xf32> to vector<2x16x16xf32>
    %40 = arith.addf %38, %39 : vector<2x16x16xf32>
    %cst_25 = arith.constant 0.000000e+00 : f32
    %41 = vector.broadcast %cst_25 : f32 to vector<2x16x16xf32>
    %42 = arith.maximumf %40, %41 : vector<2x16x16xf32>
    %cst_26 = arith.constant 0.000000e+00 : f32
    %43 = vector.broadcast %cst_26 : f32 to vector<2x1x16xf32>
    %c0_27 = arith.constant 0 : index
    %c0_28 = arith.constant 0 : index
    %c0_29 = arith.constant 0 : index
    %44 = vector.load %arg12[%c0_27, %c0_28, %c0_29] : memref<2x24x16xf32, #tpu.memory_space<vmem>>, vector<2x1x16xf32>
    tpu.vector_store %arg12[%c0_27, %c0_28, %c0_29], %43 {strides = array<i32>} : memref<2x24x16xf32, #tpu.memory_space<vmem>>, vector<2x1x16xf32>,
    %cst_30 = arith.constant 0.000000e+00 : f32
    %45 = vector.broadcast %cst_30 : f32 to vector<2x7x16xf32>
    %c0_31 = arith.constant 0 : index
    %c17_32 = arith.constant 17 : index
    %c0_33 = arith.constant 0 : index
    %46 = vector.load %arg12[%c0_31, %c17_32, %c0_33] : memref<2x24x16xf32, #tpu.memory_space<vmem>>, vector<2x7x16xf32>
    tpu.vector_store %arg12[%c0_31, %c17_32, %c0_33], %45 {strides = array<i32>} : memref<2x24x16xf32, #tpu.memory_space<vmem>>, vector<2x7x16xf32>,
    %c0_34 = arith.constant 0 : index
    %c1_35 = arith.constant 1 : index
    %c0_36 = arith.constant 0 : index
    %47 = vector.load %arg12[%c0_34, %c1_35, %c0_36] : memref<2x24x16xf32, #tpu.memory_space<vmem>>, vector<2x16x16xf32>
    tpu.vector_store %arg12[%c0_34, %c1_35, %c0_36], %42 {strides = array<i32>} : memref<2x24x16xf32, #tpu.memory_space<vmem>>, vector<2x16x16xf32>,
    %c0_37 = arith.constant 0 : index
    %c0_38 = arith.constant 0 : index
    %c0_39 = arith.constant 0 : index
    %48 = vector.load %arg12[%c0_37, %c0_38, %c0_39] : memref<2x24x16xf32, #tpu.memory_space<vmem>>, vector<2x24x16xf32>
    %49 = vector.shape_cast %48 : vector<2x24x16xf32> to vector<48x16xf32>
    %c0_40 = arith.constant 0 : index
    %c0_41 = arith.constant 0 : index
    %50 = vector.load %arg4[%c0_40, %c0_41] : memref<16x48xf32, #tpu.memory_space<vmem>>, vector<16x48xf32>
    %cst_42 = arith.constant dense<0.000000e+00> : vector<48x48xf32>
    %51 = tpu.matmul %49, %50, %cst_42 {dimension_numbers = #tpu.dot_dimension_numbers<[1], [0], [0], [1], [0, 0, 1, 1], [], []>} : vector<48x16xf32>, vector<16x48xf32>, vector<48x48xf32> -> vector<48x48xf32>
    %52 = vector.shape_cast %51 : vector<48x48xf32> to vector<2x24x48xf32>
    %53 = vector.extract_strided_slice %52 {offsets = [0, 0, 0], sizes = [2, 16, 16], strides = [1, 1, 1]} : vector<2x24x48xf32> to vector<2x16x16xf32>
    %54 = vector.extract_strided_slice %52 {offsets = [0, 1, 16], sizes = [2, 16, 16], strides = [1, 1, 1]} : vector<2x24x48xf32> to vector<2x16x16xf32>
    %55 = arith.addf %53, %54 : vector<2x16x16xf32>
    %56 = vector.extract_strided_slice %52 {offsets = [0, 2, 32], sizes = [2, 16, 16], strides = [1, 1, 1]} : vector<2x24x48xf32> to vector<2x16x16xf32>
    %57 = arith.addf %55, %56 : vector<2x16x16xf32>
    %cst_43 = arith.constant dense<0.000000e+00> : vector<16xf32>
    %58 = vector.multi_reduction <add>, %57, %cst_43 [0, 1] : vector<2x16x16xf32> to vector<16xf32>
    %59 = vector.shape_cast %58 : vector<16xf32> to vector<1x1x16xf32>
    %cst_44 = arith.constant 3.200000e+01 : f32
    %60 = vector.broadcast %cst_44 : f32 to vector<1x1x16xf32>
    %61 = arith.divf %59, %60 : vector<1x1x16xf32>
    %62 = arith.mulf %57, %57 : vector<2x16x16xf32>
    %cst_45 = arith.constant dense<0.000000e+00> : vector<16xf32>
    %63 = vector.multi_reduction <add>, %62, %cst_45 [0, 1] : vector<2x16x16xf32> to vector<16xf32>
    %64 = vector.shape_cast %63 : vector<16xf32> to vector<1x1x16xf32>
    %cst_46 = arith.constant 3.200000e+01 : f32
    %65 = vector.broadcast %cst_46 : f32 to vector<1x1x16xf32>
    %66 = arith.divf %64, %65 : vector<1x1x16xf32>
    %c0_47 = arith.constant 0 : index
    %c0_48 = arith.constant 0 : index
    %67 = vector.load %arg5[%c0_47, %c0_48] : memref<1x16xf32, #tpu.memory_space<vmem>>, vector<1x16xf32>
    %68 = arith.mulf %61, %61 : vector<1x1x16xf32>
    %69 = arith.subf %66, %68 : vector<1x1x16xf32>
    %cst_49 = arith.constant 9.99999974E-6 : f32
    %70 = vector.broadcast %cst_49 : f32 to vector<1x1x16xf32>
    %71 = arith.addf %69, %70 : vector<1x1x16xf32>
    %72 = math.rsqrt %71 : vector<1x1x16xf32>
    %73 = vector.shape_cast %67 : vector<1x16xf32> to vector<1x1x16xf32>
    %74 = arith.mulf %73, %72 : vector<1x1x16xf32>
    %c0_50 = arith.constant 0 : index
    %c0_51 = arith.constant 0 : index
    %75 = vector.load %arg6[%c0_50, %c0_51] : memref<1x16xf32, #tpu.memory_space<vmem>>, vector<1x16xf32>
    %76 = arith.mulf %61, %74 : vector<1x1x16xf32>
    %77 = vector.shape_cast %75 : vector<1x16xf32> to vector<1x1x16xf32>
    %78 = arith.subf %77, %76 : vector<1x1x16xf32>
    %79 = vector.broadcast %74 : vector<1x1x16xf32> to vector<2x16x16xf32>
    %80 = arith.mulf %57, %79 : vector<2x16x16xf32>
    %81 = vector.broadcast %78 : vector<1x1x16xf32> to vector<2x16x16xf32>
    %82 = arith.addf %80, %81 : vector<2x16x16xf32>
    %c0_52 = arith.constant 0 : index
    %c0_53 = arith.constant 0 : index
    %c0_54 = arith.constant 0 : index
    %83 = vector.load %arg0[%c0_52, %c0_53, %c0_54] : memref<2x16x8xf32, #tpu.memory_space<vmem>>, vector<2x16x8xf32>
    %84 = vector.shape_cast %83 : vector<2x16x8xf32> to vector<32x8xf32>
    %c0_55 = arith.constant 0 : index
    %c0_56 = arith.constant 0 : index
    %85 = vector.load %arg7[%c0_55, %c0_56] : memref<8x16xf32, #tpu.memory_space<vmem>>, vector<8x16xf32>
    %cst_57 = arith.constant dense<0.000000e+00> : vector<32x16xf32>
    %86 = tpu.matmul %84, %85, %cst_57 {dimension_numbers = #tpu.dot_dimension_numbers<[1], [0], [0], [1], [0, 0, 1, 1], [], []>} : vector<32x8xf32>, vector<8x16xf32>, vector<32x16xf32> -> vector<32x16xf32>
    %87 = vector.shape_cast %86 : vector<32x16xf32> to vector<2x16x16xf32>
    %cst_58 = arith.constant dense<0.000000e+00> : vector<16xf32>
    %88 = vector.multi_reduction <add>, %87, %cst_58 [0, 1] : vector<2x16x16xf32> to vector<16xf32>
    %89 = vector.shape_cast %88 : vector<16xf32> to vector<1x1x16xf32>
    %cst_59 = arith.constant 3.200000e+01 : f32
    %90 = vector.broadcast %cst_59 : f32 to vector<1x1x16xf32>
    %91 = arith.divf %89, %90 : vector<1x1x16xf32>
    %92 = arith.mulf %87, %87 : vector<2x16x16xf32>
    %cst_60 = arith.constant dense<0.000000e+00> : vector<16xf32>
    %93 = vector.multi_reduction <add>, %92, %cst_60 [0, 1] : vector<2x16x16xf32> to vector<16xf32>
    %94 = vector.shape_cast %93 : vector<16xf32> to vector<1x1x16xf32>
    %cst_61 = arith.constant 3.200000e+01 : f32
    %95 = vector.broadcast %cst_61 : f32 to vector<1x1x16xf32>
    %96 = arith.divf %94, %95 : vector<1x1x16xf32>
    %c0_62 = arith.constant 0 : index
    %c0_63 = arith.constant 0 : index
    %97 = vector.load %arg8[%c0_62, %c0_63] : memref<1x16xf32, #tpu.memory_space<vmem>>, vector<1x16xf32>
    %98 = arith.mulf %91, %91 : vector<1x1x16xf32>
    %99 = arith.subf %96, %98 : vector<1x1x16xf32>
    %cst_64 = arith.constant 9.99999974E-6 : f32
    %100 = vector.broadcast %cst_64 : f32 to vector<1x1x16xf32>
    %101 = arith.addf %99, %100 : vector<1x1x16xf32>
    %102 = math.rsqrt %101 : vector<1x1x16xf32>
    %103 = vector.shape_cast %97 : vector<1x16xf32> to vector<1x1x16xf32>
    %104 = arith.mulf %103, %102 : vector<1x1x16xf32>
    %c0_65 = arith.constant 0 : index
    %c0_66 = arith.constant 0 : index
    %105 = vector.load %arg9[%c0_65, %c0_66] : memref<1x16xf32, #tpu.memory_space<vmem>>, vector<1x16xf32>
    %106 = arith.mulf %91, %104 : vector<1x1x16xf32>
    %107 = vector.shape_cast %105 : vector<1x16xf32> to vector<1x1x16xf32>
    %108 = arith.subf %107, %106 : vector<1x1x16xf32>
    %109 = vector.broadcast %104 : vector<1x1x16xf32> to vector<2x16x16xf32>
    %110 = arith.mulf %87, %109 : vector<2x16x16xf32>
    %111 = vector.broadcast %108 : vector<1x1x16xf32> to vector<2x16x16xf32>
    %112 = arith.addf %110, %111 : vector<2x16x16xf32>
    %113 = arith.addf %82, %112 : vector<2x16x16xf32>
    %cst_67 = arith.constant 0.000000e+00 : f32
    %114 = vector.broadcast %cst_67 : f32 to vector<2x16x16xf32>
    %115 = arith.maximumf %113, %114 : vector<2x16x16xf32>
    %c0_68 = arith.constant 0 : index
    %c0_69 = arith.constant 0 : index
    %c0_70 = arith.constant 0 : index
    %116 = vector.load %arg10[%c0_68, %c0_69, %c0_70] : memref<2x16x16xf32, #tpu.memory_space<vmem>>, vector<2x16x16xf32>
    tpu.vector_store %arg10[%c0_68, %c0_69, %c0_70], %115 {strides = array<i32>} : memref<2x16x16xf32, #tpu.memory_space<vmem>>, vector<2x16x16xf32>,
    return
  }
}

</mosaic_0001>

<bundles_post_ra>
// kernel: tpu_custom_call.1
= control target key start
LH: loop header
LB: loop body
LE: loop exit
PB: predicated region body
PF: predicated region fallthrough
CT: control target
= control target key end

     0   :  { %vm36_vm0 = vcmask 57344   ;;  %vm46_vm1 = vcmask 64512   ;;  %v640_v2 = vmov 0.0   ;;  %s960_s0 = inlined_call_operand.vmem [shape: f32[2,16,8], index: 0, kind: input, shape index: {}]   ;;  %s961_s1 = inlined_call_operand.vmem [shape: f32[8,48], index: 1, kind: input, shape index: {}]   ;;  %s962_s2 = inlined_call_operand.vmem [shape: f32[1,16], index: 2, kind: input, shape index: {}]   ;;  %s963_s3 = inlined_call_operand.vmem [shape: f32[1,16], index: 3, kind: input, shape index: {}]   ;;  %s964_s4 = inlined_call_operand.vmem [shape: f32[16,48], index: 4, kind: input, shape index: {}]   ;;  %s965_s5 = inlined_call_operand.vmem [shape: f32[1,16], index: 5, kind: input, shape index: {}]   ;;  %s966_s6 = inlined_call_operand.vmem [shape: f32[1,16], index: 6, kind: input, shape index: {}]   ;;  %s967_s7 = inlined_call_operand.vmem [shape: f32[8,16], index: 7, kind: input, shape index: {}]   ;;  %s968_s8 = inlined_call_operand.vmem [shape: f32[1,16], index: 8, kind: input, shape index: {}]   ;;  %s969_s9 = inlined_call_operand.vmem [shape: f32[1,16], index: 9, kind: input, shape index: {}]   ;;  %s970_s10 = inlined_call_operand.hbm [shape: f32[2,16,16], index: 10, kind: output, shape index: {}]  }
   0x1   :  { %v57_v0 = vld [vmem:[%s961_s1] sm:$0xff]  ;;  %37 = vst.msk [vmem:[#allocation2] sm:$0x1] %vm36_vm0, %v640_v2  ;;  %v714_v3 = vld [vmem:[%s960_s0 + $0x8] sm:$0xff]  ;;  %v721_v4 = vld [vmem:[%s960_s0 + $0x10] sm:$0xff] }
   0x2   :  { %v708_v1 = vld [vmem:[%s960_s0] sm:$0xff]  ;;  %91 = vmatpush.msra.mxu0 %v57_v0  ;;  %596 = vmatpush.msra.mxu3 %v57_v0 }
   0x3   :  { %47 = vst.msk [vmem:[#allocation2 + $0x1] sm:$0xff] %vm46_vm1, %v708_v1 }
   0x4   :  { %15 = vsyncpa [#allocation5], 0  ;;  %38 = vst.msk [vmem:[#allocation2 + $0x18] sm:$0x1] %vm36_vm0, %v640_v2  ;;  %v727_v5 = vld [vmem:[%s960_s0 + $0x18] sm:$0xff]  ;;  %vm39_vm2 = vcmask 63488  }
   0x5   :  { %48 = vst.msk [vmem:[#allocation2 + $0x9] sm:$0xff] %vm46_vm1, %v714_v3  ;;  %vm144_vm3 = vcmask 1045504   ;;  %vm117_vm4 = vcmask 1046528   ;;  %s641_s0 = smov 96   ;;  %s642_s22 = smov 112   ;;  %v643_v44 = vmov 32.0  }
   0x6   :  { %49 = vst.msk [vmem:[#allocation2 + $0x19] sm:$0xff] %vm46_vm1, %v721_v4  ;;  %606 = vrcp.f32 %v643_v44  ;;  %vm171_vm5 = vcmask 130048   ;;  %vm247_vm7 = vcmask 122880   ;;  %vm250_vm8 = vcmask 129024   ;;  %v211_v44 = vld [vmem:[%s962_s2] sm:$0x1] }
   0x7   :  { %50 = vst.msk [vmem:[#allocation2 + $0x21] sm:$0xff] %vm46_vm1, %v727_v5  ;;  %s568_s17 = sshll.u32 %s970_s10, 4  ;;  %s645_s18 = smov 128   ;;  %s569_s17 = int_to_ptr.hbm [resolvable:$true] %s568_s17 }
   0x8   :  { %40 = vst.msk [vmem:[#allocation2 + $0x11] sm:$0x7f] %vm39_vm2, %v640_v2  ;;  %s646_s1 = smov 8  }
   0x9   :  { %41 = vst.msk [vmem:[#allocation2 + $0x29] sm:$0x7f] %vm39_vm2, %v640_v2 }
   0xa   :  { %v51_v6 = vld [vmem:[#allocation2] sm:$0xff]  ;;  %248 = vst.msk [vmem:[#allocation3] sm:$0x1] %vm247_vm7, %v640_v2 }
   0xb   :  { %580 = vmatmul.msk.f32.vlgmr.msra.gmra.mxu0 %vm46_vm1, %v51_v6  ;;  %249 = vst.msk [vmem:[#allocation3 + $0x18] sm:$0x1] %vm247_vm7, %v640_v2 }
   0xc   :  { %v52_v8 = vld [vmem:[#allocation2 + $0x8] sm:$0xff]  ;;  %v607_v53 = vpop.eup %606  ;;  %252 = vst.msk [vmem:[#allocation3 + $0x29] sm:$0x7f] %vm250_vm8, %v640_v2 }
   0xd   :  { %v54_v11 = vld [vmem:[#allocation2 + $0x18] sm:$0xff]  ;;  %v186_v61 = vmul.f32 32.0, %v607_v53  ;;  %vm190_vm6 = vweird.f32 %v607_v53  ;;  %251 = vst.msk [vmem:[#allocation3 + $0x11] sm:$0x7f] %vm250_vm8, %v640_v2 }
   0xe   :  { %v55_v7 = vld [vmem:[#allocation2 + $0x20] sm:$0xff] }
   0xf   :  { %584 = vmatmul.msk.f32.vlgmr.msra.gmra.mxu3 %vm46_vm1, %v55_v7  ;;  %v53_v10 = vld [vmem:[#allocation2 + $0x10] sm:$0xff] }
  0x10   :  { %v56_v9 = vld [vmem:[#allocation2 + $0x28] sm:$0xff] }
  0x13   :  { %581 = vmatmul.msk.f32.gmra.mxu0 %vm46_vm1, %v52_v8 }
  0x17   :  { %585 = vmatmul.msk.f32.gmra.mxu3 %vm46_vm1, %v56_v9 }
  0x1b   :  { %582 = vmatmul.msk.f32.gmra.mxu0 %vm46_vm1, %v53_v10  ;;  %v187_v10 = vsub.f32 1.0, %v186_v61 }
  0x23   :  { %583 = vmatmul.msk.f32.gmra.mxu0 %vm46_vm1, %v54_v11 }
  0x88   :  { %v93_v12 = vpop.f32.mrf.mxu0 }
  0x89   :  { %v118_v14 = vrot.slane %v93_v12, 1  ;;  %v145_v15 = vrot.slane %v93_v12, 2 }
  0x90   :  { %v96_v13 = vpop.f32.mrf.mxu0 }
  0x91   :  { %v119_v16 = vrot.slane %v96_v13, 1  ;;  %v146_v17 = vrot.slane %v96_v13, 2 }
  0x92   :  { %v105_v18 = vpop.f32.mrf.mxu3 }
  0x93   :  { %v147_v19 = vsel %vm144_vm3, %v145_v15, %v146_v17  ;;  %v120_v20 = vsel %vm117_vm4, %v118_v14, %v119_v16  ;;  %v124_v27 = vrot.slane %v105_v18, 1  ;;  %v151_v29 = vrot.slane %v105_v18, 2 }
  0x94   :  { %155 = vrot.lane.b32.xlu1 %v147_v19, %s641_s0  ;;  %128 = vrot.lane.b32.xlu0 %v120_v20, %s642_s22 }
  0x98   :  { %v99_v21 = vpop.f32.mrf.mxu0 }
  0x99   :  { %v121_v22 = vrot.slane %v99_v21, 1  ;;  %v148_v23 = vrot.slane %v99_v21, 2 }
  0x9a   :  { %v108_v24 = vpop.f32.mrf.mxu3 }
  0x9b   :  { %v149_v25 = vsel %vm144_vm3, %v146_v17, %v148_v23  ;;  %v122_v26 = vsel %vm117_vm4, %v119_v16, %v121_v22  ;;  %v126_v28 = vrot.slane %v108_v24, 1  ;;  %v153_v36 = vrot.slane %v108_v24, 2 }
  0x9c   :  { %157 = vrot.lane.b32.xlu2 %v149_v25, %s641_s0  ;;  %130 = vrot.lane.b32.xlu0 %v122_v26, %s642_s22 }
  0x9d   :  { %v127_v33 = vsel %vm117_vm4, %v124_v27, %v126_v28  ;;  %v154_v37 = vsel %vm144_vm3, %v151_v29, %v153_v36 }
  0xa0   :  { %v102_v30 = vpop.f32.mrf.mxu0 }
  0xa1   :  { %v123_v31 = vrot.slane %v102_v30, 1  ;;  %v150_v32 = vrot.slane %v102_v30, 2 }
  0xa3   :  { %v152_v34 = vsel %vm144_vm3, %v150_v32, %v151_v29  ;;  %v125_v35 = vsel %vm117_vm4, %v123_v31, %v124_v27 }
  0xa4   :  { %134 = vrot.lane.b32.xlu2 %v127_v33, %s642_s22  ;;  %159 = vrot.lane.b32.xlu0 %v152_v34, %s641_s0 }
  0xa5   :  { %132 = vrot.lane.b32.xlu1 %v125_v35, %s642_s22 }
  0xad   :  { %161 = vrot.lane.b32.xlu1 %v154_v37, %s641_s0  ;;  %v264_v37 = vld [vmem:[%s964_s4 + $0x8] sm:$0xff] }
  0xae   :  { %297 = vmatpush.msra.mxu1 %v264_v37  ;;  %597 = vmatpush.msrb.mxu3 %v264_v37 }
  0xf6   :  { %v158_v41 = vpop.permute.xlu2 %157 }
  0xfe   :  { %v135_v50 = vpop.permute.xlu2 %134 }
  0xff   :  { %v143_v57 = vadd.f32 %v135_v50, %v105_v18  ;;  %v188_v18 = vmul.f32 %v607_v53, %v187_v10  ;;  %v226_v50 = vld [vmem:[%s963_s3] sm:$0x1] }
 0x101   :  { %v189_v23 = vadd.f32 %v607_v53, %v188_v18 }
 0x103   :  { %v787_v28 = vsel %vm190_vm6, %v607_v53, %v189_v23 }
 0x106   :  { %v129_v38 = vpop.permute.xlu0 %128  ;;  %v156_v39 = vpop.permute.xlu1 %155 }
 0x107   :  { %v140_v43 = vadd.f32 %v129_v38, %v93_v12  ;;  %v263_v38 = vld [vmem:[%s964_s4] sm:$0xff] }
 0x108   :  { %298 = vmatpush.msra.mxu1 %v263_v38  ;;  %598 = vmatpush.msrb.mxu3 %v263_v38 }
 0x109   :  { %v761_v47 = vadd.f32 %v156_v39, %v140_v43 }
 0x10b   :  { %v193_v54 = vmul.f32 %v761_v47, %v761_v47  ;;  %v172_v58 = vsel %vm171_vm5, %v761_v47, 0.0 }
 0x10d   :  { %v197_v0 = vsel %vm171_vm5, %v193_v54, 0.0 }
 0x10e   :  { %v131_v40 = vpop.permute.xlu0 %130 }
 0x10f   :  { %v141_v42 = vadd.f32 %v131_v40, %v96_v13 }
 0x111   :  { %v759_v45 = vadd.f32 %v158_v41, %v141_v42 }
 0x113   :  { %v194_v51 = vmul.f32 %v759_v45, %v759_v45  ;;  %v173_v55 = vsel %vm171_vm5, %v759_v45, 0.0 }
 0x114   :  { %v174_v62 = vadd.f32 %v173_v55, %v172_v58 }
 0x115   :  { %v198_v59 = vsel %vm171_vm5, %v194_v51, 0.0 }
 0x116   :  { %v160_v49 = vpop.permute.xlu0 %159  ;;  %v199_v8 = vadd.f32 %v198_v59, %v197_v0 }
 0x117   :  { %v133_v46 = vpop.permute.xlu1 %132 }
 0x118   :  { %v142_v48 = vadd.f32 %v133_v46, %v102_v30 }
 0x11a   :  { %v765_v52 = vadd.f32 %v160_v49, %v142_v48 }
 0x11c   :  { %v195_v56 = vmul.f32 %v765_v52, %v765_v52  ;;  %v175_v60 = vsel %vm171_vm5, %v765_v52, 0.0 }
 0x11d   :  { %v176_v9 = vadd.f32 %v175_v60, %v174_v62 }
 0x11e   :  { %v200_v6 = vsel %vm171_vm5, %v195_v56, 0.0 }
 0x11f   :  { %v162_v63 = vpop.permute.xlu1 %161  ;;  %v201_v13 = vadd.f32 %v200_v6, %v199_v8 }
 0x120   :  { %v780_v7 = vadd.f32 %v162_v63, %v143_v57 }
 0x122   :  { %v177_v11 = vsel %vm171_vm5, %v780_v7, 0.0  ;;  %v196_v12 = vmul.f32 %v780_v7, %v780_v7 }
 0x123   :  { %v178_v14 = vadd.f32 %v177_v11, %v176_v9 }
 0x124   :  { %v202_v15 = vsel %vm171_vm5, %v196_v12, 0.0 }
 0x125   :  { %v179_v16 = vrot.slane %v178_v14, 4  ;;  %v203_v17 = vadd.f32 %v202_v15, %v201_v13 }
 0x127   :  { %v180_v19 = vadd.f32 %v179_v16, %v178_v14  ;;  %v204_v20 = vrot.slane %v203_v17, 4 }
 0x129   :  { %v181_v21 = vrot.slane %v180_v19, 2  ;;  %v205_v22 = vadd.f32 %v204_v20, %v203_v17 }
 0x12b   :  { %v182_v24 = vadd.f32 %v181_v21, %v180_v19  ;;  %v206_v25 = vrot.slane %v205_v22, 2 }
 0x12d   :  { %v183_v26 = vrot.slane %v182_v24, 1  ;;  %v207_v27 = vadd.f32 %v206_v25, %v205_v22 }
 0x12f   :  { %v184_v29 = vadd.f32 %v183_v26, %v182_v24  ;;  %v208_v30 = vrot.slane %v207_v27, 1 }
 0x131   :  { %v192_v31 = vmul.f32 %v787_v28, %v184_v29  ;;  %v209_v32 = vadd.f32 %v208_v30, %v207_v27 }
 0x133   :  { %v210_v33 = vmul.f32 %v209_v32, %v787_v28  ;;  %v212_v34 = vmul.f32 %v192_v31, %v192_v31 }
 0x135   :  { %v213_v35 = vsub.f32 %v210_v33, %v212_v34 }
 0x137   :  { %v214_v36 = vadd.f32 1e-05, %v213_v35 }
 0x139   :  { %608 = vrsqrt.f32 %v214_v36  ;;  %vm221_vm10 = vweird.f32 %v214_v36 }
 0x13f   :  { %v609_v39 = vpop.eup %608 }
 0x140   :  { %v216_v40 = vmul.f32 %v609_v39, %v214_v36  ;;  %vm222_vm9 = vweird.f32 %v609_v39 }
 0x141   :  { %vm223_vm11 = vmor %vm221_vm10, %vm222_vm9 }
 0x142   :  { %v217_v41 = vmul.f32 %v609_v39, %v216_v40 }
 0x144   :  { %v218_v42 = vmul.f32 0.5, %v217_v41 }
 0x146   :  { %v219_v43 = vsub.f32 1.5, %v218_v42 }
 0x148   :  { %v220_v46 = vmul.f32 %v609_v39, %v219_v43 }
 0x14a   :  { %v224_v48 = vsel %vm223_vm11, %v609_v39, %v220_v46 }
 0x14b   :  { %v225_v49 = vmul.f32 %v224_v48, %v211_v44 }
 0x14d   :  { %v227_v2 = vmul.f32 %v225_v49, %v192_v31  ;;  %v230_v51 = vperm.slane %v225_v49, 0 }
 0x14f   :  { %v228_v53 = vsub.f32 %v226_v50, %v227_v2  ;;  %v232_v54 = vmul.f32 %v230_v51, %v761_v47  ;;  %v233_v55 = vmul.f32 %v230_v51, %v759_v45  ;;  %v234_v56 = vmul.f32 %v230_v51, %v765_v52  ;;  %v444_v47 = vld [vmem:[%s967_s7] sm:$0xff] }
 0x150   :  { %v235_v57 = vmul.f32 %v230_v51, %v780_v7  ;;  %472 = vmatpush.msra.mxu2 %v444_v47 }
 0x151   :  { %v237_v58 = vperm.slane %v228_v53, 0  ;;  %592 = vmatmul.msk.f32.vlgmr.msra.gmra.mxu2 %vm46_vm1, %v708_v1 }
 0x153   :  { %v239_v59 = vadd.f32 %v237_v58, %v232_v54  ;;  %v240_v60 = vadd.f32 %v237_v58, %v233_v55  ;;  %v241_v61 = vadd.f32 %v237_v58, %v234_v56  ;;  %v242_v62 = vadd.f32 %v237_v58, %v235_v57 }
 0x155   :  { %v243_v63 = vmax.f32 %v239_v59, 0.0  ;;  %v244_v0 = vmax.f32 %v240_v60, 0.0  ;;  %v245_v6 = vmax.f32 %v241_v61, 0.0  ;;  %v246_v8 = vmax.f32 %v242_v62, 0.0 }
 0x157   :  { %253 = vst.msk [vmem:[#allocation3 + $0x1] sm:$0xff] %vm171_vm5, %v243_v63 }
 0x158   :  { %254 = vst.msk [vmem:[#allocation3 + $0x9] sm:$0xff] %vm171_vm5, %v244_v0 }
 0x159   :  { %255 = vst.msk [vmem:[#allocation3 + $0x19] sm:$0xff] %vm171_vm5, %v245_v6  ;;  %593 = vmatmul.msk.f32.gmra.mxu2 %vm46_vm1, %v714_v3 }
 0x15a   :  { %256 = vst.msk [vmem:[#allocation3 + $0x21] sm:$0xff] %vm171_vm5, %v246_v8 }
 0x15e   :  { %v257_v45 = vld [vmem:[#allocation3] sm:$0xff] }
 0x15f   :  { %586 = vmatmul.msk.f32.vlgmr.msra.gmra.mxu1 %vm171_vm5, %v257_v45  ;;  %v258_v7 = vld [vmem:[#allocation3 + $0x8] sm:$0xff]  ;;  %v259_v1 = vld [vmem:[#allocation3 + $0x10] sm:$0xff] }
 0x160   :  { %v260_v10 = vld [vmem:[#allocation3 + $0x18] sm:$0xff] }
 0x161   :  { %v261_v52 = vld [vmem:[#allocation3 + $0x20] sm:$0xff]  ;;  %v262_v9 = vld [vmem:[#allocation3 + $0x28] sm:$0xff]  ;;  %594 = vmatmul.msk.f32.gmra.mxu2 %vm46_vm1, %v721_v4 }
 0x162   :  { %590 = vmatmul.msk.f32.vlgmr.msrb.gmra.mxu3 %vm171_vm5, %v261_v52 }
 0x167   :  { %587 = vmatmul.msk.f32.gmra.mxu1 %vm171_vm5, %v258_v7 }
 0x169   :  { %595 = vmatmul.msk.f32.gmra.mxu2 %vm46_vm1, %v727_v5 }
 0x16a   :  { %591 = vmatmul.msk.f32.gmra.mxu3 %vm171_vm5, %v262_v9 }
 0x16f   :  { %588 = vmatmul.msk.f32.gmra.mxu1 %vm171_vm5, %v259_v1 }
 0x177   :  { %589 = vmatmul.msk.f32.gmra.mxu1 %vm171_vm5, %v260_v10 }
 0x1d4   :  { %v864_v35 = vpop.f32.mrf.mxu2 }
 0x1d5   :  { %v486_v38 = vsel %vm171_vm5, %v864_v35, 0.0  ;;  %v500_v39 = vmul.f32 %v864_v35, %v864_v35 }
 0x1d7   :  { %v504_v43 = vsel %vm171_vm5, %v500_v39, 0.0 }
 0x1dc   :  { %v832_v3 = vpop.f32.mrf.mxu1  ;;  %v866_v36 = vpop.f32.mrf.mxu2 }
 0x1dd   :  { %v324_v12 = vrot.slane %v832_v3, 1  ;;  %v350_v5 = vrot.slane %v832_v3, 2  ;;  %v487_v40 = vsel %vm171_vm5, %v866_v36, 0.0  ;;  %v501_v41 = vmul.f32 %v866_v36, %v866_v36 }
 0x1de   :  { %v488_v42 = vadd.f32 %v487_v40, %v486_v38 }
 0x1df   :  { %v505_v44 = vsel %vm171_vm5, %v501_v41, 0.0 }
 0x1e0   :  { %v506_v50 = vadd.f32 %v505_v44, %v504_v43 }
 0x1e4   :  { %v834_v11 = vpop.f32.mrf.mxu1  ;;  %v868_v37 = vpop.f32.mrf.mxu2 }
 0x1e5   :  { %v325_v13 = vrot.slane %v834_v11, 1  ;;  %v351_v14 = vrot.slane %v834_v11, 2  ;;  %v842_v17 = vpop.f32.mrf.mxu3  ;;  %v489_v46 = vsel %vm171_vm5, %v868_v37, 0.0  ;;  %v502_v48 = vmul.f32 %v868_v37, %v868_v37 }
 0x1e6   :  { %v330_v22 = vrot.slane %v842_v17, 1  ;;  %v356_v23 = vrot.slane %v842_v17, 2  ;;  %v490_v2 = vadd.f32 %v489_v46, %v488_v42 }
 0x1e7   :  { %v326_v4 = vsel %vm117_vm4, %v324_v12, %v325_v13  ;;  %v352_v18 = vsel %vm144_vm3, %v350_v5, %v351_v14  ;;  %v507_v51 = vsel %vm171_vm5, %v502_v48, 0.0 }
 0x1e8   :  { %334 = vrot.lane.b32.xlu2 %v326_v4, %s642_s22  ;;  %v508_v55 = vadd.f32 %v507_v51, %v506_v50 }
 0x1ec   :  { %v306_v15 = vpop.f32.mrf.mxu1  ;;  %v884_v49 = vpop.f32.mrf.mxu2 }
 0x1ed   :  { %v327_v16 = vrot.slane %v306_v15, 1  ;;  %v353_v20 = vrot.slane %v306_v15, 2  ;;  %v315_v30 = vpop.f32.mrf.mxu3  ;;  %v491_v53 = vsel %vm171_vm5, %v884_v49, 0.0  ;;  %v503_v54 = vmul.f32 %v884_v49, %v884_v49 }
 0x1ee   :  { %v358_v31 = vrot.slane %v315_v30, 2  ;;  %v332_v32 = vrot.slane %v315_v30, 1  ;;  %v492_v56 = vadd.f32 %v491_v53, %v490_v2 }
 0x1ef   :  { %v328_v19 = vsel %vm117_vm4, %v325_v13, %v327_v16  ;;  %v354_v26 = vsel %vm144_vm3, %v351_v14, %v353_v20  ;;  %v509_v57 = vsel %vm171_vm5, %v503_v54, 0.0 }
 0x1f0   :  { %360 = vrot.lane.b32.xlu2 %v352_v18, %s641_s0  ;;  %336 = vrot.lane.b32.xlu0 %v328_v19, %s642_s22  ;;  %v359_v33 = vsel %vm144_vm3, %v356_v23, %v358_v31  ;;  %v333_v34 = vsel %vm117_vm4, %v330_v22, %v332_v32  ;;  %v493_v58 = vrot.slane %v492_v56, 4  ;;  %v510_v59 = vadd.f32 %v509_v57, %v508_v55 }
 0x1f2   :  { %v494_v60 = vadd.f32 %v493_v58, %v492_v56  ;;  %v511_v61 = vrot.slane %v510_v59, 4 }
 0x1f4   :  { %v848_v21 = vpop.f32.mrf.mxu1  ;;  %v495_v62 = vrot.slane %v494_v60, 2  ;;  %v512_v63 = vadd.f32 %v511_v61, %v510_v59 }
 0x1f5   :  { %v329_v24 = vrot.slane %v848_v21, 1  ;;  %v355_v25 = vrot.slane %v848_v21, 2 }
 0x1f6   :  { %v496_v6 = vadd.f32 %v495_v62, %v494_v60  ;;  %v513_v8 = vrot.slane %v512_v63, 2 }
 0x1f7   :  { %v357_v27 = vsel %vm144_vm3, %v355_v25, %v356_v23  ;;  %v331_v29 = vsel %vm117_vm4, %v329_v24, %v330_v22 }
 0x1f8   :  { %362 = vrot.lane.b32.xlu0 %v354_v26, %s641_s0  ;;  %364 = vrot.lane.b32.xlu2 %v357_v27, %s641_s0  ;;  %v497_v47 = vrot.slane %v496_v6, 1  ;;  %v514_v45 = vadd.f32 %v513_v8, %v512_v63 }
 0x1f9   :  { %338 = vrot.lane.b32.xlu1 %v331_v29, %s642_s22 }
 0x1fa   :  { %v498_v9 = vadd.f32 %v497_v47, %v496_v6  ;;  %v515_v1 = vrot.slane %v514_v45, 1 }
 0x1fc   :  { %v893_v10 = vmul.f32 %v498_v9, %v787_v28  ;;  %v516_v12 = vadd.f32 %v515_v1, %v514_v45 }
 0x1fe   :  { %v517_v16 = vmul.f32 %v516_v12, %v787_v28  ;;  %v519_v18 = vmul.f32 %v893_v10, %v893_v10 }
 0x200   :  { %366 = vrot.lane.b32.xlu0 %v359_v33, %s641_s0 }
 0x201   :  { %340 = vrot.lane.b32.xlu1 %v333_v34, %s642_s22 }
 0x242   :  { %v335_v0 = vpop.permute.xlu2 %334 }
 0x243   :  { %v346_v4 = vadd.f32 %v335_v0, %v832_v3  ;;  %v520_v3 = vsub.f32 %v517_v16, %v519_v18 }
 0x245   :  { %v521_v31 = vadd.f32 1e-05, %v520_v3  ;;  %v408_v3 = vld [vmem:[%s965_s5] sm:$0x1]  ;;  %s644_s5 = smov [#allocation4]  }
 0x247   :  { %610 = vrsqrt.f32 %v521_v31  ;;  %vm528_vm12 = vweird.f32 %v521_v31 }
 0x24a   :  { %v361_v7 = vpop.permute.xlu2 %360 }
 0x24b   :  { %v902_v19 = vadd.f32 %v361_v7, %v346_v4  ;;  %v518_v4 = vld [vmem:[%s968_s8] sm:$0x1] }
 0x24d   :  { %v390_v24 = vmul.f32 %v902_v19, %v902_v19  ;;  %v376_v26 = vsel %vm171_vm5, %v902_v19, 0.0  ;;  %v611_v54 = vpop.eup %610 }
 0x24e   :  { %v523_v57 = vmul.f32 %v611_v54, %v521_v31  ;;  %vm529_vm13 = vweird.f32 %v611_v54 }
 0x24f   :  { %v394_v32 = vsel %vm171_vm5, %v390_v24, 0.0  ;;  %vm530_vm14 = vmor %vm528_vm12, %vm529_vm13 }
 0x250   :  { %v524_v62 = vmul.f32 %v611_v54, %v523_v57 }
 0x252   :  { %v365_v22 = vpop.permute.xlu2 %364  ;;  %v525_v47 = vmul.f32 0.5, %v524_v62 }
 0x254   :  { %v526_v9 = vsub.f32 1.5, %v525_v47 }
 0x256   :  { %v527_v12 = vmul.f32 %v611_v54, %v526_v9 }
 0x262   :  { %v337_v52 = vpop.permute.xlu0 %336 }
 0x263   :  { %v347_v13 = vadd.f32 %v337_v52, %v834_v11 }
 0x26a   :  { %v363_v14 = vpop.permute.xlu0 %362 }
 0x26b   :  { %v897_v15 = vadd.f32 %v363_v14, %v347_v13  ;;  %v339_v5 = vpop.permute.xlu1 %338  ;;  %v531_v14 = vsel %vm530_vm14, %v611_v54, %v527_v12 }
 0x26c   :  { %v348_v20 = vadd.f32 %v339_v5, %v848_v21  ;;  %v532_v16 = vmul.f32 %v531_v14, %v518_v4 }
 0x26d   :  { %v391_v23 = vmul.f32 %v897_v15, %v897_v15  ;;  %v377_v25 = vsel %vm171_vm5, %v897_v15, 0.0 }
 0x26e   :  { %v907_v11 = vadd.f32 %v365_v22, %v348_v20  ;;  %v378_v29 = vadd.f32 %v377_v25, %v376_v26  ;;  %v537_v25 = vperm.slane %v532_v16, 0 }
 0x26f   :  { %v395_v27 = vsel %vm171_vm5, %v391_v23, 0.0  ;;  %v533_v23 = vld [vmem:[%s969_s9] sm:$0x1] }
 0x270   :  { %v392_v21 = vmul.f32 %v907_v11, %v907_v11  ;;  %v379_v33 = vsel %vm171_vm5, %v907_v11, 0.0  ;;  %v396_v38 = vadd.f32 %v395_v27, %v394_v32  ;;  %v540_v32 = vmul.f32 %v537_v25, %v866_v36 }
 0x271   :  { %v380_v42 = vadd.f32 %v379_v33, %v378_v29  ;;  %v539_v29 = vmul.f32 %v537_v25, %v864_v35  ;;  %v541_v33 = vmul.f32 %v537_v25, %v868_v37 }
 0x272   :  { %v367_v39 = vpop.permute.xlu0 %366  ;;  %v397_v40 = vsel %vm171_vm5, %v392_v21, 0.0 }
 0x273   :  { %v341_v30 = vpop.permute.xlu1 %340  ;;  %v398_v46 = vadd.f32 %v397_v40, %v396_v38 }
 0x274   :  { %v349_v34 = vadd.f32 %v341_v30, %v842_v17 }
 0x276   :  { %v923_v41 = vadd.f32 %v367_v39, %v349_v34  ;;  %v542_v34 = vmul.f32 %v537_v25, %v884_v49 }
 0x278   :  { %v381_v43 = vsel %vm171_vm5, %v923_v41, 0.0  ;;  %v393_v44 = vmul.f32 %v923_v41, %v923_v41 }
 0x279   :  { %v382_v48 = vadd.f32 %v381_v43, %v380_v42 }
 0x27a   :  { %v399_v50 = vsel %vm171_vm5, %v393_v44, 0.0 }
 0x27b   :  { %v383_v2 = vrot.slane %v382_v48, 4  ;;  %v400_v17 = vadd.f32 %v399_v50, %v398_v46 }
 0x27d   :  { %v384_v51 = vadd.f32 %v383_v2, %v382_v48  ;;  %v401_v53 = vrot.slane %v400_v17, 4 }
 0x27f   :  { %v385_v55 = vrot.slane %v384_v51, 2  ;;  %v402_v56 = vadd.f32 %v401_v53, %v400_v17 }
 0x281   :  { %v386_v58 = vadd.f32 %v385_v55, %v384_v51  ;;  %v403_v59 = vrot.slane %v402_v56, 2 }
 0x283   :  { %v387_v60 = vrot.slane %v386_v58, 1  ;;  %v404_v61 = vadd.f32 %v403_v59, %v402_v56 }
 0x285   :  { %v388_v63 = vadd.f32 %v387_v60, %v386_v58  ;;  %v405_v0 = vrot.slane %v404_v61, 1 }
 0x287   :  { %v389_v6 = vmul.f32 %v388_v63, %v787_v28  ;;  %v406_v8 = vadd.f32 %v405_v0, %v404_v61 }
 0x289   :  { %v407_v45 = vmul.f32 %v406_v8, %v787_v28  ;;  %v409_v52 = vmul.f32 %v389_v6, %v389_v6  ;;  %v534_v28 = vmul.f32 %v532_v16, %v893_v10  ;;  %v423_v10 = vld [vmem:[%s966_s6] sm:$0x1]  ;;  %s566_s6 = sshll.u32 %s644_s5, 4  ;;  %s567_s6 = int_to_ptr.vmem [resolvable:$true] %s566_s6 }
 0x28b   :  { %v410_v7 = vsub.f32 %v407_v45, %v409_v52  ;;  %v535_v26 = vsub.f32 %v533_v23, %v534_v28 }
 0x28d   :  { %v411_v1 = vadd.f32 1e-05, %v410_v7  ;;  %v544_v38 = vperm.slane %v535_v26, 0 }
 0x28f   :  { %612 = vrsqrt.f32 %v411_v1  ;;  %vm418_vm0 = vweird.f32 %v411_v1  ;;  %v546_v35 = vadd.f32 %v544_v38, %v539_v29  ;;  %v547_v48 = vadd.f32 %v544_v38, %v540_v32 }
 0x290   :  { %v548_v50 = vadd.f32 %v544_v38, %v541_v33  ;;  %v549_v2 = vadd.f32 %v544_v38, %v542_v34 }
 0x295   :  { %v613_v13 = vpop.eup %612 }
 0x296   :  { %v413_v5 = vmul.f32 %v613_v13, %v411_v1  ;;  %vm419_vm15 = vweird.f32 %v613_v13 }
 0x297   :  { %vm420_vm1 = vmor %vm418_vm0, %vm419_vm15 }
 0x298   :  { %v414_v18 = vmul.f32 %v613_v13, %v413_v5 }
 0x29a   :  { %v415_v20 = vmul.f32 0.5, %v414_v18 }
 0x29c   :  { %v416_v22 = vsub.f32 1.5, %v415_v20 }
 0x29e   :  { %v417_v24 = vmul.f32 %v613_v13, %v416_v22 }
 0x2a0   :  { %v421_v27 = vsel %vm420_vm1, %v613_v13, %v417_v24 }
 0x2a1   :  { %v422_v21 = vmul.f32 %v421_v27, %v408_v3 }
 0x2a3   :  { %v424_v30 = vmul.f32 %v422_v21, %v389_v6  ;;  %v427_v31 = vperm.slane %v422_v21, 0 }
 0x2a5   :  { %v425_v39 = vsub.f32 %v423_v10, %v424_v30  ;;  %v429_v40 = vmul.f32 %v427_v31, %v902_v19  ;;  %v430_v42 = vmul.f32 %v427_v31, %v897_v15  ;;  %v431_v43 = vmul.f32 %v427_v31, %v907_v11 }
 0x2a6   :  { %v432_v44 = vmul.f32 %v427_v31, %v923_v41 }
 0x2a7   :  { %v434_v46 = vperm.slane %v425_v39, 0 }
 0x2a9   :  { %v439_v36 = vadd.f32 %v434_v46, %v432_v44  ;;  %v436_v17 = vadd.f32 %v434_v46, %v429_v40  ;;  %v437_v37 = vadd.f32 %v434_v46, %v430_v42  ;;  %v438_v51 = vadd.f32 %v434_v46, %v431_v43 }
 0x2ab   :  { %v553_v49 = vadd.f32 %v549_v2, %v439_v36  ;;  %v550_v53 = vadd.f32 %v546_v35, %v436_v17  ;;  %v551_v54 = vadd.f32 %v547_v48, %v437_v37  ;;  %v552_v55 = vadd.f32 %v548_v50, %v438_v51 }
 0x2ad   :  { %v557_v15 = vmax.f32 %v553_v49, 0.0  ;;  %v554_v19 = vmax.f32 %v550_v53, 0.0  ;;  %v555_v11 = vmax.f32 %v551_v54, 0.0  ;;  %v556_v41 = vmax.f32 %v552_v55, 0.0 }
 0x2af   :  { %561 = vst.msk [vmem:[#allocation4 + $0x18] sm:$0xff] %vm171_vm5, %v557_v15 }
 0x2b0   :  { %558 = vst.msk [vmem:[#allocation4] sm:$0xff] %vm171_vm5, %v554_v19 }
 0x2b1   :  { %559 = vst.msk [vmem:[#allocation4 + $0x8] sm:$0xff] %vm171_vm5, %v555_v11 }
 0x2b2   :  { %560 = vst.msk [vmem:[#allocation4 + $0x10] sm:$0xff] %vm171_vm5, %v556_v41 }
 0x2b3   :  { %574 = dma.vmem_to_hbm [thread:$0]  %s567_s6, 512, %s569_s17, [#allocation5], %s645_s18, %s645_s18, %s646_s1  }
 0x2b4   :  { %638 = dma.done.wait [#allocation5], 512  }
 0x2b5   :  { %639 = vsyncadd [#allocation5], 4294966784 }
 0x2b6   :  { %579 = vsyncpa [#allocation5], 1 }

</bundles_post_ra>
